<compile_context>
chip_gen: v7x
topology: tpu7x:2x2x1
jax: 0.10.0
libtpu: 0.0.40
codegen_flags: <defaults>
</compile_context>

<pallas_src>
import jax
import jax.numpy as jnp
from jax.experimental import pallas as pl
from jax.experimental.pallas import tpu as pltpu


LANE = 128                      # small-path slab width (one vreg lane row)
WIDE_LANE = 512                 # lane-dense slab width for the streaming path
ROW_ALIGN = 32                  # row multiple covering f32/bf16/f16 sublane packing
MIN_BLOCK_ROWS = 256            # floor: 256 * 512 * 4B = 0.5 MiB f32 blocks
TARGET_BLOCK_BYTES = 4 << 20    # ~4 MiB HBM block regardless of dtype
TARGET_STEPS = 8                # aim for >= 8 grid steps when the tensor allows
SMALL_MAX_ELEMS = 128 * 1024    # <= 512 KiB f32: single block, no pipelining
VMEM_LIMIT_BYTES = 32 << 20     # required raise on v5e, safe on v7x


def _cdiv(a: int, b: int) -> int:
    return -(-a // b)


def _round_up(a: int, b: int) -> int:
    return ((a + b - 1) // b) * b


def _swish_kernel(x_ref, o_ref):
    xf = x_ref[...].astype(jnp.float32)
    # swish(x) = x * sigmoid(x) = 0.5 * x * (1 + tanh(x / 2))
    # Single EUP transcendental per element; saturates cleanly for large |x|.
    o_ref[...] = (0.5 * xf * (1.0 + jnp.tanh(0.5 * xf))).astype(o_ref.dtype)


def _swish_2d(x2d: jax.Array, block_rows: int) -> jax.Array:
    rows, cols = x2d.shape
    grid = (_cdiv(rows, block_rows),)
    return pl.pallas_call(
        _swish_kernel,
        out_shape=jax.ShapeDtypeStruct((rows, cols), x2d.dtype),
        grid=grid,
        in_specs=[pl.BlockSpec((block_rows, cols), lambda i: (i, 0))],
        out_specs=pl.BlockSpec((block_rows, cols), lambda i: (i, 0)),
        compiler_params=pltpu.CompilerParams(
            dimension_semantics=("parallel",),
            vmem_limit_bytes=VMEM_LIMIT_BYTES,
        ),
    )(x2d)


def _pick_block_rows(rows: int, itemsize: int) -> int:
    """Dtype-aware block rows: ~4 MiB cap, 256-row floor, ~8 (even) grid steps."""
    max_rows = max(
        ROW_ALIGN,
        (TARGET_BLOCK_BYTES // (WIDE_LANE * itemsize)) // ROW_ALIGN * ROW_ALIGN,
    )
    br = _round_up(_cdiv(rows, TARGET_STEPS), ROW_ALIGN)
    br = max(MIN_BLOCK_ROWS, min(br, max_rows))
    # Prefer an even step count (>= 2 pipelined steps per v7x TensorCore) as
    # long as it does not shrink blocks below the floor.
    steps = _cdiv(rows, br)
    if steps > 1 and steps % 2:
        br_even = _round_up(_cdiv(rows, steps + 1), ROW_ALIGN)
        if br_even >= MIN_BLOCK_ROWS and _cdiv(rows, br_even) % 2 == 0:
            br = br_even
    return br


def swish(x: jax.Array) -> jax.Array:
    """Elementwise swish (x * sigmoid(x)) via a Pallas TPU kernel."""
    orig_shape = x.shape
    if x.size == 0:
        return x
    if not jnp.issubdtype(x.dtype, jnp.floating):
        # Torch's sigmoid only accepts float tensors; promote others to f32.
        x = x.astype(jnp.float32)
    n = x.size
    dtype = x.dtype
    itemsize = jnp.dtype(dtype).itemsize
    x_flat = jnp.reshape(x, (-1,))

    if n <= SMALL_MAX_ELEMS:
        # Small fast path: one full-array block, at most a tiny lane pad.
        n_pad = (-n) % LANE
        if n_pad:
            x_flat = jnp.concatenate([x_flat, jnp.zeros((n_pad,), dtype)])
        rows = x_flat.size // LANE
        out = _swish_2d(x_flat.reshape(rows, LANE), block_rows=rows)
        out_flat = out.reshape(-1)
        if n_pad:
            out_flat = out_flat[:n]
        return out_flat.reshape(orig_shape)

    # Streaming path: lane-dense (rows, 512) slab, multi-step pipelined grid.
    n_tail = n % WIDE_LANE
    n_main = n - n_tail
    x_main = x_flat[:n_main] if n_tail else x_flat
    rows = n_main // WIDE_LANE
    out_main = _swish_2d(
        x_main.reshape(rows, WIDE_LANE), _pick_block_rows(rows, itemsize)
    )
    out_flat = out_main.reshape(-1)
    if n_tail:
        # Tiny (<512 elem) tail computed with plain jnp: avoids the zero-pad
        # concat + trailing slice (two full extra HBM passes) of the old path.
        xt = x_flat[n_main:].astype(jnp.float32)
        out_tail = (xt * jax.nn.sigmoid(xt)).astype(dtype)
        out_flat = jnp.concatenate([out_flat, out_tail])
    return out_flat.reshape(orig_shape)


if __name__ == "__main__":
    key = jax.random.PRNGKey(0)
    k_small, k_big, k_odd = jax.random.split(key, 3)

    # Small NCHW input consistent with how Swish is used inside the decoder.
    x_small = jax.random.normal(k_small, (2, 4, 16, 16), dtype=jnp.float32)
    y_small = jax.block_until_ready(swish(x_small))
    ref_small = x_small * jax.nn.sigmoid(x_small)
    assert y_small.shape == x_small.shape and y_small.dtype == x_small.dtype
    assert jnp.allclose(y_small, ref_small, atol=1e-5, rtol=1e-5)

    # Larger input to exercise the streaming (wide-lane, pipelined) path.
    x_big = jax.random.normal(k_big, (4, 16, 64, 64), dtype=jnp.float32)
    y_big = jax.block_until_ready(swish(x_big))
    ref_big = x_big * jax.nn.sigmoid(x_big)
    assert y_big.shape == x_big.shape and y_big.dtype == x_big.dtype
    assert jnp.allclose(y_big, ref_big, atol=1e-5, rtol=1e-5)

    # Unaligned size to exercise the prefix + jnp-tail path (no pad/concat).
    x_odd = jax.random.normal(k_odd, (3, 7, 97, 97), dtype=jnp.float32)
    y_odd = jax.block_until_ready(swish(x_odd))
    ref_odd = x_odd * jax.nn.sigmoid(x_odd)
    assert y_odd.shape == x_odd.shape and y_odd.dtype == x_odd.dtype
    assert jnp.allclose(y_odd, ref_odd, atol=1e-5, rtol=1e-5)

    print("KERNEL_OK")
</pallas_src>

<mosaic_0001>
module attributes {stable_mosaic.version = 11 : i64} {
  func.func @_swish_kernel(%arg0: i32, %arg1: memref<16x128xf32, #tpu.memory_space<vmem>>, %arg2: memref<16x128xf32, #tpu.memory_space<vmem>>) attributes {dimension_semantics = [#tpu.dimension_semantics<parallel>], iteration_bounds = array<i64: 1>, scalar_prefetch = 0 : i64, scratch_operands = 0 : i64, tpu.core_type = #tpu.core_type<tc>, window_params = [{transform_indices = @transform_0, window_bounds = array<i64: 16, 128>}, {transform_indices = @transform_1, window_bounds = array<i64: 16, 128>}]} {
    %c0 = arith.constant 0 : index
    %c0_0 = arith.constant 0 : index
    %0 = vector.load %arg1[%c0, %c0_0] : memref<16x128xf32, #tpu.memory_space<vmem>>, vector<16x128xf32>
    %cst = arith.constant 5.000000e-01 : f32
    %1 = vector.broadcast %cst : f32 to vector<16x128xf32>
    %2 = arith.mulf %1, %0 : vector<16x128xf32>
    %cst_1 = arith.constant 5.000000e-01 : f32
    %3 = vector.broadcast %cst_1 : f32 to vector<16x128xf32>
    %4 = arith.mulf %3, %0 : vector<16x128xf32>
    %5 = math.tanh %4 : vector<16x128xf32>
    %cst_2 = arith.constant 1.000000e+00 : f32
    %6 = vector.broadcast %cst_2 : f32 to vector<16x128xf32>
    %7 = arith.addf %6, %5 : vector<16x128xf32>
    %8 = arith.mulf %2, %7 : vector<16x128xf32>
    %c0_3 = arith.constant 0 : index
    %c0_4 = arith.constant 0 : index
    %9 = vector.load %arg2[%c0_3, %c0_4] : memref<16x128xf32, #tpu.memory_space<vmem>>, vector<16x128xf32>
    tpu.vector_store %arg2[%c0_3, %c0_4], %8 {strides = array<i32>} : memref<16x128xf32, #tpu.memory_space<vmem>>, vector<16x128xf32>,
    return
  }
  func.func @transform_0(%arg0: i32) -> (i32, i32) {
    %c0_i32 = arith.constant 0 : i32
    %c0_i32_0 = arith.constant 0 : i32
    return %arg0, %c0_i32 : i32, i32
  }
  func.func @transform_1(%arg0: i32) -> (i32, i32) {
    %c0_i32 = arith.constant 0 : i32
    %c0_i32_0 = arith.constant 0 : i32
    return %arg0, %c0_i32 : i32, i32
  }
}

</mosaic_0001>

<bundles_post_ra>
// kernel: tpu_custom_call.1
= control target key start
LH: loop header
LB: loop body
LE: loop exit
PB: predicated region body
PF: predicated region fallthrough
CT: control target
= control target key end

     0   :  { %6 = vsyncpa [#allocation3], 0  ;;  %s152_s0 = inlined_call_operand.hbm [shape: f32[16,128], index: 0, kind: input, shape index: {}]   ;;  %s153_s1 = inlined_call_operand.hbm [shape: f32[16,128], index: 1, kind: output, shape index: {}]  }
   0x1   :  { %7 = vsyncpa [#allocation4], 0  ;;  %s108_s6 = smov [#allocation2]   ;;  %s60_s10 = scalar_lea.hbm %s152_s0, 256 }
   0x2   :  { %s13_s7 = sshll.u32 %s108_s6, 4  ;;  %p61_p0 = scmp.ne.s32.totalorder %s152_s0, %s60_s10  ;;  %s14_s7 = int_to_ptr.vmem [resolvable:$true] %s13_s7 }
   0x3   :  { %p64_p1 = scmp.lt.u32.totalorder %s60_s10, %s152_s0 }
   0x5   :  { %p66_p2 = pnand %p64_p1, %p61_p0 }
   0x7   :  { %69 = shalt.err (!%p66_p2)
}
   0x8   :  { %s70_s15 = scalar_lea.vmem %s14_s7, 256  ;;  %p75_p4 = scmp.lt.s32.totalorder %s14_s7, %s14_s7 }
   0x9   :  { %p71_p3 = scmp.ne.s32.totalorder %s14_s7, %s70_s15  ;;  %p76_p5 = scmp.lt.s32.totalorder %s70_s15, %s70_s15 }
   0xb   :  { %p77_p6 = por %p76_p5, %p75_p4 }
   0xd   :  { %p78_p7 = pnand %p77_p6, %p71_p3 }
   0xf   :  { %81 = shalt.err (!%p78_p7)
}
  0x10   :  { %s109_s16 = smov 128   ;;  %s110_s17 = smov 8  }
  0x11   :  { %19 = dma.hbm_to_vmem [thread:$0]  %s152_s0, 256, %s14_s7, [#allocation3], %s109_s16, %s109_s16, %s110_s17  }
  0x12   :  { %104 = dma.done.wait [#allocation3], 256  }
  0x13   :  { %105 = vsyncadd [#allocation3], 4294967040  ;;  %v23_v0 = vld [vmem:[#allocation2] sm:$0xff]  ;;  %v24_v1 = vld [vmem:[#allocation2 + $0x8] sm:$0xff]  ;;  %s111_s20 = smov [#allocation5]  }
  0x14   :  { %v25_v2 = vmul.f32 0.5, %v23_v0  ;;  %v26_v3 = vmul.f32 0.5, %v24_v1  ;;  %s40_s21 = sshll.u32 %s111_s20, 4  ;;  %s41_s21 = int_to_ptr.vmem [resolvable:$true] %s40_s21 }
  0x15   :  { %s82_s0 = scalar_lea.vmem %s41_s21, 256  ;;  %p87_p9 = scmp.lt.s32.totalorder %s41_s21, %s41_s21 }
  0x16   :  { %56 = vtanh.f32 %v25_v2  ;;  %p83_p8 = scmp.ne.s32.totalorder %s41_s21, %s82_s0  ;;  %p88_p10 = scmp.lt.s32.totalorder %s82_s0, %s82_s0 }
  0x17   :  { %58 = vtanh.f32 %v26_v3 }
  0x18   :  { %p89_p11 = por %p88_p10, %p87_p9 }
  0x1a   :  { %p90_p12 = pnand %p89_p11, %p83_p8 }
  0x20   :  { %v57_v4 = vpop.eup %56 }
  0x21   :  { %v59_v5 = vpop.eup %58  ;;  %v29_v6 = vadd.f32 1.0, %v57_v4 }
  0x22   :  { %v30_v7 = vadd.f32 1.0, %v59_v5 }
  0x23   :  { %v31_v8 = vmul.f32 %v29_v6, %v25_v2 }
  0x24   :  { %v32_v9 = vmul.f32 %v30_v7, %v26_v3 }
  0x25   :  { %33 = vst [vmem:[#allocation5] sm:$0xff] %v31_v8 }
  0x26   :  { %34 = vst [vmem:[#allocation5 + $0x8] sm:$0xff] %v32_v9 }
  0x27   :  { %93 = shalt.err (!%p90_p12)
}
  0x28   :  { %s94_s24 = scalar_lea.hbm %s153_s1, 256 }
  0x29   :  { %p95_p13 = scmp.ne.s32.totalorder %s153_s1, %s94_s24  ;;  %p98_p0 = scmp.lt.u32.totalorder %s94_s24, %s153_s1 }
  0x2b   :  { %p100_p1 = pnand %p98_p0, %p95_p13 }
  0x2d   :  { %103 = shalt.err (!%p100_p1)
}
  0x2e   :  { %46 = dma.vmem_to_hbm [thread:$0]  %s41_s21, 256, %s153_s1, [#allocation4], %s109_s16, %s109_s16, %s110_s17  }
  0x2f   :  { %106 = dma.done.wait [#allocation4], 256  }
  0x30   :  { %107 = vsyncadd [#allocation4], 4294967040 }
  0x31   :  { %50 = vsyncpa [#allocation3], 1 }
  0x32   :  { %51 = vsyncpa [#allocation4], 1 }

</bundles_post_ra>
